<compile_context>
chip_gen: v6e
topology: v6e:2x2x1
jax: 0.10.0
libtpu: 0.0.40
codegen_flags: <defaults>
</compile_context>

<pallas_src>
import jax
import jax.numpy as jnp
from jax.experimental import pallas as pl
from jax.experimental.pallas import tpu as pltpu

LANE = 128


# -----------------------------------------------------------------------------
# Forward: mixed_spectrum = concentrations @ X, as unrolled per-dye VPU FMAs
# over dense (rows, 128) slabs (no MXU for a (1,4)x(4,W) contraction).
# -----------------------------------------------------------------------------
def _mix_kernel(c_ref, x_ref, o_ref):
    # c_ref: (D,) f32 scalars in SMEM
    # x_ref: (D, rows, 128) f32 in VMEM
    # o_ref: (rows, 128) f32 in VMEM (lane-dense, unmasked store)
    n_dyes = x_ref.shape[0]
    acc = c_ref[0] * x_ref[0]
    for d in range(1, n_dyes):            # static unroll; nr_of_dyes is tiny
        acc = acc + c_ref[d] * x_ref[d]
    o_ref[...] = acc.astype(o_ref.dtype)


def _pad_to_rows(x_2d, row_multiple):
    """Zero-pad the wavelength axis of (D, W) to a multiple of row_multiple*128
    and reshape to dense (D, rows, 128) slabs."""
    n_dyes, n_wl = x_2d.shape
    cols = row_multiple * LANE
    n_wl_pad = pl.cdiv(n_wl, cols) * cols
    if n_wl_pad != n_wl:
        x_2d = jnp.pad(x_2d, ((0, 0), (0, n_wl_pad - n_wl)))
    return x_2d.reshape(n_dyes, n_wl_pad // LANE, LANE)


def dye_forward(concentrations, X, *, single_block_max=262144, wl_tile_rows=64):
    """mixed = concentrations @ X.  concentrations: (D,), X: (D, W) -> (W,)."""
    n_dyes, n_wl = X.shape
    c = concentrations.astype(jnp.float32)
    X = X.astype(jnp.float32)

    if n_wl <= single_block_max:
        # One un-gridded call: (4, W) f32 is only 16 B per wavelength, so even
        # hundreds of thousands of wavelengths fit comfortably in VMEM and we
        # pay zero per-grid-step overhead.
        x3 = _pad_to_rows(X, 1)
        rows = x3.shape[1]
        out = pl.pallas_call(
            _mix_kernel,
            out_shape=jax.ShapeDtypeStruct((rows, LANE), jnp.float32),
            in_specs=[
                pl.BlockSpec(memory_space=pltpu.MemorySpace.SMEM),
                pl.BlockSpec(memory_space=pltpu.MemorySpace.VMEM),
            ],
            out_specs=pl.BlockSpec(memory_space=pltpu.MemorySpace.VMEM),
        )(c, x3)
        return out.reshape(rows * LANE)[:n_wl]

    # Very large spectrum: stream lane-dense (wl_tile_rows, 128) blocks; the
    # BlockSpec double-buffers the X tiles and the axis is "parallel" so v7x
    # can shard it across its two TensorCores.
    x3 = _pad_to_rows(X, wl_tile_rows)
    rows = x3.shape[1]
    n_blocks = rows // wl_tile_rows
    out = pl.pallas_call(
        _mix_kernel,
        out_shape=jax.ShapeDtypeStruct((rows, LANE), jnp.float32),
        grid=(n_blocks,),
        in_specs=[
            pl.BlockSpec(memory_space=pltpu.MemorySpace.SMEM),   # whole c each step
            pl.BlockSpec((n_dyes, wl_tile_rows, LANE), lambda i: (0, i, 0)),
        ],
        out_specs=pl.BlockSpec((wl_tile_rows, LANE), lambda i: (i, 0)),
        compiler_params=pltpu.CompilerParams(
            dimension_semantics=("parallel",)),
    )(c, x3)
    return out.reshape(rows * LANE)[:n_wl]


# -----------------------------------------------------------------------------
# Fused training loop: n_iter steps of (forward -> L1 grad -> Adam -> clamp)
# inside ONE pallas_call.  All state lives on-chip for the whole loop.
# -----------------------------------------------------------------------------
def _make_train_kernel(n_dyes, n_iter, lr, beta1, beta2, eps, max_conc,
                       n_wl_true, unroll):
    inv_w = 1.0 / float(n_wl_true)   # mean over TRUE wavelengths only

    def kernel(c0_ref, x_ref, t_ref, c_out_ref, loss_ref):
        # (1, D) lane index used to scatter per-dye scalar gradients into the
        # (1, D) gradient vector without a concatenate (hoisted: 1 vreg).
        lane_idx = jax.lax.broadcasted_iota(jnp.int32, (1, n_dyes), 1)

        def body(_, carry):
            # c/m/v: (1, D); b1t/b2t/loss: (1, 1).  X and target are re-read
            # from their VMEM refs every iteration (loads are cheap; keeps
            # vreg pressure bounded for large spectra).
            c, m, v, b1t, b2t, _ = carry

            # forward: unrolled per-dye FMAs over dense (rows, 128) slabs
            pred = c[0:1, 0:1] * x_ref[0]
            for d in range(1, n_dyes):
                pred = pred + c[0:1, d:d + 1] * x_ref[d]
            r = pred - t_ref[...]
            # loss recorded BEFORE the update (== torch's losses[i]); padded
            # columns are zero in both X and target so they contribute 0.
            loss = jnp.sum(jnp.abs(r), keepdims=True) * inv_w          # (1,1)

            # dL/dc_d = mean_w sign(r_w) * X[d,w]; sign(0) == 0 as in torch.
            sgn = jnp.where(r > 0.0, 1.0, jnp.where(r < 0.0, -1.0, 0.0))
            g = jnp.zeros((1, n_dyes), jnp.float32)
            for d in range(n_dyes):
                g_d = jnp.sum(sgn * x_ref[d], keepdims=True)           # (1,1)
                g = jnp.where(lane_idx == d, g_d, g)
            g = g * inv_w                                              # (1,D)

            # Adam (torch defaults) with bias correction folded into a scalar
            # step size:  alpha_t = lr*sqrt(1-b2^t)/(1-b1^t),
            #             eps_adj = eps*sqrt(1-b2^t)
            # => mathematically identical to m_hat/(sqrt(v_hat)+eps).
            m = beta1 * m + (1.0 - beta1) * g
            v = beta2 * v + (1.0 - beta2) * (g * g)
            b1t = b1t * beta1
            b2t = b2t * beta2
            bc2_sqrt = jnp.sqrt(1.0 - b2t)                             # (1,1)
            alpha = lr * bc2_sqrt * pl.reciprocal(1.0 - b1t, approx=True)
            denom = jnp.sqrt(v) + eps * bc2_sqrt                       # (1,D)
            c = c - (alpha * m) * pl.reciprocal(denom, approx=True)
            c = jnp.clip(c, 0.0, max_conc)                             # clamp
            return c, m, v, b1t, b2t, loss

        init = (c0_ref[...],
                jnp.zeros((1, n_dyes), jnp.float32),
                jnp.zeros((1, n_dyes), jnp.float32),
                jnp.ones((1, 1), jnp.float32),
                jnp.ones((1, 1), jnp.float32),
                jnp.zeros((1, 1), jnp.float32))
        c, _, _, _, _, last_loss = jax.lax.fori_loop(
            0, n_iter, body, init, unroll=unroll)

        c_out_ref[...] = c
        loss_ref[...] = last_loss

    return kernel


def dye_train(concentrations, X, target, *, n_iter, lr=0.01, beta1=0.9,
              beta2=0.999, eps=1e-8, max_concentration=5.0, unroll=4):
    n_dyes, n_wl = X.shape
    x3 = _pad_to_rows(X.astype(jnp.float32), 1)                   # (D, R, 128)
    rows = x3.shape[1]
    t3 = _pad_to_rows(target.astype(jnp.float32).reshape(1, n_wl), 1)[0]

    kernel = _make_train_kernel(n_dyes, int(n_iter), float(lr), float(beta1),
                                float(beta2), float(eps),
                                float(max_concentration), n_wl, int(unroll))

    # Whole working set stays resident (no grid); size the scoped VMEM limit
    # accordingly (v7x tops out at 64 MiB physical VMEM).
    # TODO(synk): spectra too large for VMEM need an in-kernel wavelength
    # tiling / emit_pipeline fallback; not implemented here.
    working_set = 4 * (x3.size + t3.size) * 2 + (2 << 20)
    vmem_limit = int(min(max(working_set, 32 * 1024 * 1024), 64 * 1024 * 1024))

    c_out, loss = pl.pallas_call(
        kernel,
        out_shape=(
            jax.ShapeDtypeStruct((1, n_dyes), jnp.float32),
            jax.ShapeDtypeStruct((1, 1), jnp.float32),
        ),
        in_specs=[
            pl.BlockSpec(memory_space=pltpu.MemorySpace.VMEM),
            pl.BlockSpec(memory_space=pltpu.MemorySpace.VMEM),
            pl.BlockSpec(memory_space=pltpu.MemorySpace.VMEM),
        ],
        out_specs=(
            pl.BlockSpec(memory_space=pltpu.MemorySpace.VMEM),
            pl.BlockSpec(memory_space=pltpu.MemorySpace.VMEM),
        ),
        compiler_params=pltpu.CompilerParams(vmem_limit_bytes=vmem_limit),
    )(concentrations.reshape(1, n_dyes).astype(jnp.float32), x3, t3)
    return c_out.reshape(n_dyes), loss[0, 0]


class DyeConcentrationOptimizerJax:
    """JAX/Pallas port of DyeConcentrationOptimizer (forward + fused Adam loop)."""

    def __init__(self, wavelengths, nr_of_dyes, n_iter=10000,
                 max_concentration=5, lr=0.01, seed=0):
        self.nr_of_dyes = nr_of_dyes
        self.wavelengths = wavelengths
        self.n_iter = n_iter
        self.max_concentration = max_concentration
        self.lr = lr
        # torch.distributions.Uniform(0, 0.1).sample((nr_of_dyes,)) equivalent.
        key = jax.random.PRNGKey(seed)
        self.concentrations = jax.random.uniform(
            key, (nr_of_dyes,), dtype=jnp.float32, minval=0.0, maxval=0.1)

    def forward(self, X):
        return dye_forward(self.concentrations, X)

    def train_loop(self, input_spectra, target_spectrum):
        # Entire n_iter-step Adam optimization runs inside ONE pallas_call.
        # TODO(synk): per-iteration loss history (torch returns a Python list)
        # is not written back; only the last recorded loss is returned.
        c_final, last_loss = dye_train(
            self.concentrations, input_spectra, target_spectrum,
            n_iter=self.n_iter, lr=self.lr,
            max_concentration=self.max_concentration)
        self.concentrations = c_final
        return last_loss


# -----------------------------------------------------------------------------
# Pure-JAX reference Adam loop (torch-equivalent) for correctness checks.
# -----------------------------------------------------------------------------
def _ref_train(c0, X, target, n_iter, lr=0.01, b1=0.9, b2=0.999, eps=1e-8,
               cmax=5.0):
    W = X.shape[1]

    def body(i, carry):
        c, m, v, _ = carry
        pred = c @ X
        r = pred - target
        loss = jnp.mean(jnp.abs(r))
        g = (jnp.sign(r) @ X.T) / W
        m = b1 * m + (1.0 - b1) * g
        v = b2 * v + (1.0 - b2) * g * g
        t = (i + 1).astype(jnp.float32)
        m_hat = m / (1.0 - b1 ** t)
        v_hat = v / (1.0 - b2 ** t)
        c = jnp.clip(c - lr * m_hat / (jnp.sqrt(v_hat) + eps), 0.0, cmax)
        return c, m, v, loss

    c, _, _, last = jax.lax.fori_loop(
        0, n_iter, body,
        (c0, jnp.zeros_like(c0), jnp.zeros_like(c0), jnp.float32(0.0)))
    return c, last


if __name__ == "__main__":
    nr_of_dyes = 4
    n_wl = 200            # NOT a multiple of 128: exercises padding/masking
    n_wl_big = 4000       # exercises the gridded lane-dense forward path

    key = jax.random.PRNGKey(0)
    k_small, k_big = jax.random.split(key)
    wavelengths = jnp.linspace(400.0, 700.0, n_wl)
    X = jax.random.uniform(k_small, (nr_of_dyes, n_wl), dtype=jnp.float32)
    X_big = jax.random.uniform(k_big, (nr_of_dyes, n_wl_big), dtype=jnp.float32)

    model = DyeConcentrationOptimizerJax(wavelengths, nr_of_dyes, n_iter=2000)
    c0 = model.concentrations

    # --- forward, single-block dense path vs plain-JAX reference -------------
    mixed = jax.block_until_ready(model.forward(X))
    ref = jnp.sum(c0[:, None] * X, axis=0)
    assert mixed.shape == (n_wl,)
    assert jnp.allclose(mixed, ref, atol=1e-5, rtol=1e-5)

    # --- forward, gridded lane-dense path (small cutover just to exercise it)
    mixed_big = jax.block_until_ready(
        dye_forward(c0, X_big, single_block_max=2048, wl_tile_rows=16))
    ref_big = jnp.sum(c0[:, None] * X_big, axis=0)
    assert mixed_big.shape == (n_wl_big,)
    assert jnp.allclose(mixed_big, ref_big, atol=1e-5, rtol=1e-5)

    # --- fused Adam loop vs the pure-JAX Adam reference (short run) ----------
    true_c = jnp.linspace(0.25, 2.0, nr_of_dyes, dtype=jnp.float32)
    target = jnp.sum(true_c[:, None] * X, axis=0)
    c_k, loss_k = jax.block_until_ready(dye_train(c0, X, target, n_iter=100))
    c_r, loss_r = _ref_train(c0, X, target, 100)
    assert jnp.allclose(c_k, c_r, atol=2e-2)
    assert abs(float(loss_k) - float(loss_r)) < 2e-2

    # --- full fused training loop: loss must drop substantially --------------
    init_loss = float(jnp.mean(jnp.abs(ref - target)))
    final_loss = float(jax.block_until_ready(model.train_loop(X, target)))
    assert jnp.all(jnp.isfinite(model.concentrations))
    assert jnp.all(model.concentrations >= 0.0)
    assert jnp.all(model.concentrations <= model.max_concentration)
    assert final_loss < 0.5 * init_loss

    print("KERNEL_OK")
</pallas_src>

<mosaic_0001>
module attributes {stable_mosaic.version = 11 : i64} {
  func.func @_mix_kernel(%arg0: memref<4xf32, #tpu.memory_space<smem>>, %arg1: memref<4x2x128xf32, #tpu.memory_space<vmem>>, %arg2: memref<2x128xf32, #tpu.memory_space<vmem>>) attributes {dimension_semantics = [], scalar_prefetch = 0 : i64, scratch_operands = 0 : i64, tpu.core_type = #tpu.core_type<tc>} {
    %c0 = arith.constant 0 : index
    %0 = memref.load %arg0[%c0] : memref<4xf32, #tpu.memory_space<smem>>
    %c0_0 = arith.constant 0 : index
    %c0_1 = arith.constant 0 : index
    %c0_2 = arith.constant 0 : index
    %1 = vector.load %arg1[%c0_0, %c0_1, %c0_2] : memref<4x2x128xf32, #tpu.memory_space<vmem>>, vector<1x2x128xf32>
    %2 = vector.shape_cast %1 : vector<1x2x128xf32> to vector<2x128xf32>
    %3 = vector.broadcast %0 : f32 to vector<2x128xf32>
    %4 = arith.mulf %3, %2 : vector<2x128xf32>
    %c1 = arith.constant 1 : index
    %5 = memref.load %arg0[%c1] : memref<4xf32, #tpu.memory_space<smem>>
    %c1_3 = arith.constant 1 : index
    %c0_4 = arith.constant 0 : index
    %c0_5 = arith.constant 0 : index
    %6 = vector.load %arg1[%c1_3, %c0_4, %c0_5] : memref<4x2x128xf32, #tpu.memory_space<vmem>>, vector<1x2x128xf32>
    %7 = vector.shape_cast %6 : vector<1x2x128xf32> to vector<2x128xf32>
    %8 = vector.broadcast %5 : f32 to vector<2x128xf32>
    %9 = arith.mulf %8, %7 : vector<2x128xf32>
    %10 = arith.addf %4, %9 : vector<2x128xf32>
    %c2 = arith.constant 2 : index
    %11 = memref.load %arg0[%c2] : memref<4xf32, #tpu.memory_space<smem>>
    %c2_6 = arith.constant 2 : index
    %c0_7 = arith.constant 0 : index
    %c0_8 = arith.constant 0 : index
    %12 = vector.load %arg1[%c2_6, %c0_7, %c0_8] : memref<4x2x128xf32, #tpu.memory_space<vmem>>, vector<1x2x128xf32>
    %13 = vector.shape_cast %12 : vector<1x2x128xf32> to vector<2x128xf32>
    %14 = vector.broadcast %11 : f32 to vector<2x128xf32>
    %15 = arith.mulf %14, %13 : vector<2x128xf32>
    %16 = arith.addf %10, %15 : vector<2x128xf32>
    %c3 = arith.constant 3 : index
    %17 = memref.load %arg0[%c3] : memref<4xf32, #tpu.memory_space<smem>>
    %c3_9 = arith.constant 3 : index
    %c0_10 = arith.constant 0 : index
    %c0_11 = arith.constant 0 : index
    %18 = vector.load %arg1[%c3_9, %c0_10, %c0_11] : memref<4x2x128xf32, #tpu.memory_space<vmem>>, vector<1x2x128xf32>
    %19 = vector.shape_cast %18 : vector<1x2x128xf32> to vector<2x128xf32>
    %20 = vector.broadcast %17 : f32 to vector<2x128xf32>
    %21 = arith.mulf %20, %19 : vector<2x128xf32>
    %22 = arith.addf %16, %21 : vector<2x128xf32>
    %c0_12 = arith.constant 0 : index
    %c0_13 = arith.constant 0 : index
    %23 = vector.load %arg2[%c0_12, %c0_13] : memref<2x128xf32, #tpu.memory_space<vmem>>, vector<2x128xf32>
    tpu.vector_store %arg2[%c0_12, %c0_13], %22 {strides = array<i32>} : memref<2x128xf32, #tpu.memory_space<vmem>>, vector<2x128xf32>,
    return
  }
}

</mosaic_0001>

<bundles_post_ra>
// kernel: tpu_custom_call.1
= control target key start
LH: loop header
LB: loop body
LE: loop exit
PB: predicated region body
PF: predicated region fallthrough
CT: control target
= control target key end

     0   :  { %7 = vsyncpa [#allocation5], 0  ;;  %s167_s0 = inlined_call_operand.hbm [shape: f32[4], index: 0, kind: input, shape index: {}]   ;;  %s168_s1 = inlined_call_operand.hbm [shape: f32[4,2,128], index: 1, kind: input, shape index: {}]   ;;  %s169_s2 = inlined_call_operand.hbm [shape: f32[2,128], index: 2, kind: output, shape index: {}]  }
   0x1   :  { %8 = vsyncpa [#allocation3], 0 }
   0x2   :  { %9 = vsyncpa [#allocation4], 0  ;;  %s138_s9 = smov [#allocation2]   ;;  %s139_s12 = smov [#allocation6]  }
   0x3   :  { %17 = dma.hbm_to_smem %s167_s0, 16, %s138_s9, [#allocation5]  }
   0x4   :  { %s23_s13 = sshll.u32 %s139_s12, 4  ;;  %s24_s13 = int_to_ptr.vmem [resolvable:$true] %s23_s13 }
   0x5   :  { %s100_s14 = scalar_lea.vmem %s24_s13, 128  ;;  %p105_p1 = scmp.lt.s32.totalorder %s24_s13, %s24_s13 }
   0x6   :  { %p101_p0 = scmp.ne.s32.totalorder %s24_s13, %s100_s14  ;;  %p106_p2 = scmp.lt.s32.totalorder %s100_s14, %s100_s14 }
   0x8   :  { %p107_p3 = por %p106_p2, %p105_p1 }
   0xa   :  { %p108_p4 = pnand %p107_p3, %p101_p0 }
   0xc   :  { %111 = shalt.err (!%p108_p4)
}
   0xd   :  { %s140_s15 = smov 32   ;;  %s141_s16 = smov 2  }
   0xe   :  { %29 = dma.hbm_to_vmem [thread:$0]  %s168_s1, 128, %s24_s13, [#allocation3], %s140_s15, %s140_s15, %s141_s16  }
   0xf   :  { %132 = dma.done.wait [#allocation5], 16  }
  0x10   :  { %133 = vsyncadd [#allocation5], 4294967280 }
  0x11   :  { %134 = dma.done.wait [#allocation3], 128  }
  0x12   :  { %135 = vsyncadd [#allocation3], 4294967168 }
  0x13   :  { %36 = sfence }
  0x14   :  { %s37_s0 = sld [smem:[#allocation2]]  ;;  %v38_v0 = vld [vmem:[#allocation6] sm:$0x3]  ;;  %v43_v1 = vld [vmem:[#allocation6 + $0x2] sm:$0x3]  ;;  %s142_s1 = smov [#allocation7]  }
  0x15   :  { %s76_s19 = sld [smem:[#allocation2 + $0x1]]  ;;  %v49_v3 = vld [vmem:[#allocation6 + $0x4] sm:$0x3]  ;;  %v55_v6 = vld [vmem:[#allocation6 + $0x6] sm:$0x3]  ;;  %s66_s22 = sshll.u32 %s142_s1, 4  ;;  %s67_s22 = int_to_ptr.vmem [resolvable:$true] %s66_s22 }
  0x16   :  { %s77_s20 = sld [smem:[#allocation2 + $0x2]]  ;;  %s112_s23 = scalar_lea.vmem %s67_s22, 32 }
  0x17   :  { %s78_s21 = sld [smem:[#allocation2 + $0x3]]  ;;  %p113_p5 = scmp.ne.s32.totalorder %s67_s22, %s112_s23 }
  0x18   :  { %p117_p6 = scmp.lt.s32.totalorder %s67_s22, %s67_s22  ;;  %p118_p7 = scmp.lt.s32.totalorder %s112_s23, %s112_s23 }
  0x1a   :  { %v39_v2 = vstv %s37_s0  ;;  %p119_p8 = por %p118_p7, %p117_p6 }
  0x1b   :  { %v40_v4 = vmul.f32 %v39_v2, %v38_v0  ;;  %v44_v5 = vstv %s76_s19 }
  0x1c   :  { %v45_v7 = vmul.f32 %v44_v5, %v43_v1  ;;  %v50_v8 = vstv %s77_s20  ;;  %p120_p9 = pnand %p119_p8, %p113_p5 }
  0x1d   :  { %v51_v9 = vmul.f32 %v50_v8, %v49_v3  ;;  %v56_v10 = vstv %s78_s21 }
  0x1e   :  { %v46_v11 = vadd.f32 %v45_v7, %v40_v4  ;;  %v57_v12 = vmul.f32 %v56_v10, %v55_v6 }
  0x20   :  { %v52_v13 = vadd.f32 %v51_v9, %v46_v11 }
  0x22   :  { %v58_v14 = vadd.f32 %v57_v12, %v52_v13 }
  0x24   :  { %59 = vst [vmem:[#allocation7] sm:$0x3] %v58_v14 }
  0x25   :  { %123 = shalt.err (!%p120_p9)
}
  0x26   :  { %69 = dma.vmem_to_hbm [thread:$0]  %s67_s22, 32, %s169_s2, [#allocation4]  }
  0x27   :  { %136 = dma.done.wait [#allocation4], 32  }
  0x28   :  { %137 = vsyncadd [#allocation4], 4294967264 }
  0x29   :  { %73 = vsyncpa [#allocation3], 1 }
  0x2a   :  { %74 = vsyncpa [#allocation4], 1 }
  0x2b   :  { %75 = vsyncpa [#allocation5], 1 }

</bundles_post_ra>
